<compile_context>
chip_gen: v6e
topology: v6e:2x2x1
jax: 0.10.0
libtpu: 0.0.40
codegen_flags: <defaults>
</compile_context>

<pallas_src>
import math

import jax
import jax.numpy as jnp
from jax import lax
from jax.experimental import pallas as pl
from jax.experimental.pallas import tpu as pltpu

EPS = 1e-5
NEG_SLOPE = 0.01  # nn.LeakyReLU default


def _round_up(n, m):
    return (n + m - 1) // m * m


def _leaky_relu(x):
    return jnp.where(x >= 0, x, NEG_SLOPE * x)


def _fold_bn(w, b, gamma, beta, rmean, rvar, eps=EPS):
    """Fold eval-mode BatchNorm1d into the preceding Linear (trace time).

    BN_eval(x @ W + b) = x @ (W * s) + ((b - rmean) * s + beta),
    with s = gamma / sqrt(rvar + eps).
    """
    inv = gamma * lax.rsqrt(rvar + eps)               # (out,)
    w_f = w * inv[None, :]                            # (in, out)
    b_f = (b - rmean) * inv + beta                    # (out,)
    return w_f, b_f.reshape(1, -1)


def _mlp_kernel(x_ref, w1_ref, b1_ref, w2_ref, b2_ref, w3_ref, b3_ref, o_ref):
    # Layer 1: x streamed in its HBM dtype; bf16 cast here (free on the VPU),
    # bf16 x bf16 -> f32 accumulation on the MXU (BN folded into w1/b1).
    x = x_ref[...].astype(jnp.bfloat16)
    h1 = jnp.dot(x, w1_ref[...], preferred_element_type=jnp.float32)
    h1 = _leaky_relu(h1 + b1_ref[...])

    # Layer 2 (128 -> 64): small f32 matmul (BN folded).
    h2 = jnp.dot(h1, w2_ref[...], preferred_element_type=jnp.float32)
    h2 = _leaky_relu(h2 + b2_ref[...])

    # Layer 3 (64 -> 1) + exp, produced lane-dense: contract both last dims,
    # w3_row (1, 64) . h2 (TB, 64)^T -> (1, TB) with batch on the lane axis.
    # Avoids the degenerate lane-sparse N=1 matmul / masked output stores.
    z3 = lax.dot_general(w3_ref[...], h2, (((1,), (1,)), ((), ())),
                         preferred_element_type=jnp.float32)      # (1, TB)
    o_ref[...] = jnp.exp(z3 + b3_ref[...]).reshape(o_ref.shape)   # (1, 1, TB)


def _choose_tile(B, in_size, block_b, x_bytes):
    """Pick a batch tile (multiple of 128) that amortizes per-step overhead,
    keeps >= 4 grid steps when B allows, and fits a ~40 MiB VMEM budget
    (double-buffered x tile + activations + resident weights) for v7x."""
    tb = _round_up(min(block_b, max(B, 128)), 128)

    # Keep the grid >= 4 steps when possible (step-overhead amortization and
    # something for both v7x TensorCores to shard via the "parallel" axis).
    while tb > 128 and pl.cdiv(B, tb) < 4:
        tb -= 128

    def footprint(t):
        return (2 * t * in_size * x_bytes      # x tile, double-buffered
                + 2 * t * 4                    # output tile, double-buffered
                + t * (128 + 64) * 4           # h1 / h2 activations (f32)
                + in_size * 128 * 2            # w1 (bf16, resident)
                + 128 * 64 * 4                 # w2 (f32, resident)
                + (128 + 64 + 64 + 1) * 4)     # biases / w3 / b3

    budget = 40 << 20                          # safe on v7x's 64 MiB VMEM
    while tb > 128 and footprint(tb) > budget:
        tb -= 128
    return tb, footprint(tb)


def reg_basic_dinov2_forward(x, params, *, block_b=2048):
    """Eval-mode forward. x: (B, in_size) f32/bf16 -> (B, 1) float32."""
    B, in_size = x.shape

    # Stream x in its native dtype (no extra HBM cast pass in the wrapper).
    if x.dtype not in (jnp.float32, jnp.bfloat16):
        x = x.astype(jnp.float32)
    x_bytes = jnp.dtype(x.dtype).itemsize

    # Fold eval-mode BN (running stats + affine) into the Linear layers.
    w1f, b1f = _fold_bn(params["w1"], params["b1"], params["g1"], params["be1"],
                        params["rm1"], params["rv1"])
    w2f, b2f = _fold_bn(params["w2"], params["b2"], params["g2"], params["be2"],
                        params["rm2"], params["rv2"])
    w1_bf = w1f.astype(jnp.bfloat16)                           # resident, tiny
    w2f = w2f.astype(jnp.float32)
    b1f = b1f.astype(jnp.float32)
    b2f = b2f.astype(jnp.float32)
    w3_row = params["w3"].reshape(1, -1).astype(jnp.float32)   # (1, 64)
    b3 = params["b3"].reshape(1, 1).astype(jnp.float32)        # (1, 1)

    tb, fp = _choose_tile(B, in_size, block_b, x_bytes)
    # No jnp.pad: ragged last block over-reads; the garbage rows map to output
    # positions >= B and are sliced off below.
    num_tiles = pl.cdiv(B, tb)

    # VMEM limit from the actual footprint (~1.3x), clamped to a sane range.
    vmem_limit = int(min(max(int(1.3 * fp), 8 << 20), 48 << 20))

    out = pl.pallas_call(
        _mlp_kernel,
        out_shape=jax.ShapeDtypeStruct((num_tiles, 1, tb), jnp.float32),
        grid=(num_tiles,),
        in_specs=[
            pl.BlockSpec((tb, in_size), lambda i: (i, 0)),    # x: streamed tile
            pl.BlockSpec((in_size, 128), lambda i: (0, 0)),   # w1 (bf16, resident)
            pl.BlockSpec((1, 128), lambda i: (0, 0)),         # b1 (BN folded)
            pl.BlockSpec((128, 64), lambda i: (0, 0)),        # w2: resident
            pl.BlockSpec((1, 64), lambda i: (0, 0)),          # b2 (BN folded)
            pl.BlockSpec((1, 64), lambda i: (0, 0)),          # w3 row
            pl.BlockSpec((1, 1), lambda i: (0, 0)),           # b3
        ],
        out_specs=pl.BlockSpec((1, 1, tb), lambda i: (i, 0, 0)),
        compiler_params=pltpu.CompilerParams(
            dimension_semantics=("parallel",),
            vmem_limit_bytes=vmem_limit,
        ),
    )(x, w1_bf, b1f, w2f, b2f, w3_row, b3)

    # (num_tiles, 1, TB) lane-dense tiles -> flat batch order -> (B, 1).
    return out.reshape(num_tiles * tb)[:B].reshape(B, 1)


def init_params(key, in_size):
    """Deterministic synthetic parameters (PyTorch-like init).

    Linear weights are stored pre-transposed as (in_features, out_features);
    each BatchNorm1d carries (gamma, beta, running_mean, running_var).
    """
    ks = jax.random.split(key, 14)

    def lin(kw, kb, fan_in, fan_out):
        bound = 1.0 / math.sqrt(fan_in)
        w = jax.random.uniform(kw, (fan_in, fan_out), jnp.float32, -bound, bound)
        b = jax.random.uniform(kb, (fan_out,), jnp.float32, -bound, bound)
        return w, b

    w1, b1 = lin(ks[0], ks[1], in_size, 128)
    w2, b2 = lin(ks[2], ks[3], 128, 64)
    w3, b3 = lin(ks[4], ks[5], 64, 1)

    def bn(kg, kb, km, kv, f):
        return (jax.random.uniform(kg, (f,), jnp.float32, 0.8, 1.2),   # gamma
                0.1 * jax.random.normal(kb, (f,), jnp.float32),        # beta
                0.1 * jax.random.normal(km, (f,), jnp.float32),        # running_mean
                jax.random.uniform(kv, (f,), jnp.float32, 0.5, 1.5))   # running_var

    g1, be1, rm1, rv1 = bn(ks[6], ks[7], ks[8], ks[9], 128)
    g2, be2, rm2, rv2 = bn(ks[10], ks[11], ks[12], ks[13], 64)

    return {
        "w1": w1, "b1": b1, "g1": g1, "be1": be1, "rm1": rm1, "rv1": rv1,
        "w2": w2, "b2": b2, "g2": g2, "be2": be2, "rm2": rm2, "rv2": rv2,
        "w3": w3, "b3": b3,
    }


def _reference_eval(x, p):
    """Pure-JAX f32 eval-mode forward (unfolded BN) — semantic reference."""
    def bn(h, g, be, rm, rv):
        return (h - rm) * lax.rsqrt(rv + EPS) * g + be
    h1 = _leaky_relu(bn(x @ p["w1"] + p["b1"], p["g1"], p["be1"], p["rm1"], p["rv1"]))
    h2 = _leaky_relu(bn(h1 @ p["w2"] + p["b2"], p["g2"], p["be2"], p["rm2"], p["rv2"]))
    return jnp.exp(h2 @ p["w3"] + p["b3"]).reshape(-1, 1)


def _reference_folded(x, p):
    """Pure-JAX reference using the same BN fold + bf16 layer-1 as the kernel."""
    w1f, b1f = _fold_bn(p["w1"], p["b1"], p["g1"], p["be1"], p["rm1"], p["rv1"])
    w2f, b2f = _fold_bn(p["w2"], p["b2"], p["g2"], p["be2"], p["rm2"], p["rv2"])
    h1 = _leaky_relu(
        jnp.dot(x.astype(jnp.bfloat16), w1f.astype(jnp.bfloat16),
                preferred_element_type=jnp.float32) + b1f)
    h2 = _leaky_relu(jnp.dot(h1, w2f, preferred_element_type=jnp.float32) + b2f)
    return jnp.exp(h2 @ p["w3"] + p["b3"]).reshape(-1, 1)


if __name__ == "__main__":
    key = jax.random.PRNGKey(0)
    k_x, k_p = jax.random.split(key)

    # Small DINOv2-ish feature dim; B=250 deliberately not a multiple of the
    # 128-row tile so the padding-free ragged last block is exercised.
    B, in_size = 250, 384
    x = jax.random.normal(k_x, (B, in_size), jnp.float32)
    params = init_params(k_p, in_size)

    out = jax.block_until_ready(reg_basic_dinov2_forward(x, params))
    assert out.shape == (B, 1), out.shape
    assert bool(jnp.all(jnp.isfinite(out)))

    # Tight check vs. a pure-JAX reference with identical folding / dtypes.
    ref = jax.block_until_ready(_reference_folded(x, params))
    assert jnp.allclose(out, ref, rtol=5e-3, atol=1e-4), \
        float(jnp.max(jnp.abs(out - ref)))

    # Looser check vs. the unfolded f32 eval-mode forward (bf16 layer-1 error).
    ref_full = jax.block_until_ready(_reference_eval(x, params))
    assert jnp.allclose(out, ref_full, rtol=5e-2, atol=5e-2), \
        float(jnp.max(jnp.abs(out - ref_full)))

    print("KERNEL_OK")
</pallas_src>

<mosaic_0001>
module attributes {stable_mosaic.version = 11 : i64} {
  func.func @_mlp_kernel(%arg0: i32, %arg1: memref<128x384xf32, #tpu.memory_space<vmem>>, %arg2: memref<384x128xbf16, #tpu.memory_space<vmem>>, %arg3: memref<1x128xf32, #tpu.memory_space<vmem>>, %arg4: memref<128x64xf32, #tpu.memory_space<vmem>>, %arg5: memref<1x64xf32, #tpu.memory_space<vmem>>, %arg6: memref<1x64xf32, #tpu.memory_space<vmem>>, %arg7: memref<1x1xf32, #tpu.memory_space<vmem>>, %arg8: memref<1x1x128xf32, #tpu.memory_space<vmem>>) attributes {dimension_semantics = [#tpu.dimension_semantics<parallel>], iteration_bounds = array<i64: 2>, scalar_prefetch = 0 : i64, scratch_operands = 0 : i64, tpu.core_type = #tpu.core_type<tc>, window_params = [{transform_indices = @transform_0, window_bounds = array<i64: 128, 384>}, {pipeline_mode = #tpu.pipeline_mode<synchronous>, transform_indices = @transform_1, window_bounds = array<i64: 384, 128>}, {pipeline_mode = #tpu.pipeline_mode<synchronous>, transform_indices = @transform_2, window_bounds = array<i64: 1, 128>}, {pipeline_mode = #tpu.pipeline_mode<synchronous>, transform_indices = @transform_3, window_bounds = array<i64: 128, 64>}, {pipeline_mode = #tpu.pipeline_mode<synchronous>, transform_indices = @transform_4, window_bounds = array<i64: 1, 64>}, {pipeline_mode = #tpu.pipeline_mode<synchronous>, transform_indices = @transform_5, window_bounds = array<i64: 1, 64>}, {pipeline_mode = #tpu.pipeline_mode<synchronous>, transform_indices = @transform_6, window_bounds = array<i64: 1, 1>}, {transform_indices = @transform_7, window_bounds = array<i64: 1, 1, 128>}]} {
    %c0 = arith.constant 0 : index
    %c0_0 = arith.constant 0 : index
    %0 = vector.load %arg1[%c0, %c0_0] : memref<128x384xf32, #tpu.memory_space<vmem>>, vector<128x384xf32>
    %1 = arith.truncf %0 : vector<128x384xf32> to vector<128x384xbf16>
    %c0_1 = arith.constant 0 : index
    %c0_2 = arith.constant 0 : index
    %2 = vector.load %arg2[%c0_1, %c0_2] : memref<384x128xbf16, #tpu.memory_space<vmem>>, vector<384x128xbf16>
    %cst = arith.constant dense<0.000000e+00> : vector<128x128xf32>
    %3 = tpu.matmul %1, %2, %cst {dimension_numbers = #tpu.dot_dimension_numbers<[1], [0], [0], [1], [0, 0, 1, 1], [], []>} : vector<128x384xbf16>, vector<384x128xbf16>, vector<128x128xf32> -> vector<128x128xf32>
    %c0_3 = arith.constant 0 : index
    %c0_4 = arith.constant 0 : index
    %4 = vector.load %arg3[%c0_3, %c0_4] : memref<1x128xf32, #tpu.memory_space<vmem>>, vector<1x128xf32>
    %5 = vector.broadcast %4 : vector<1x128xf32> to vector<128x128xf32>
    %6 = arith.addf %3, %5 : vector<128x128xf32>
    %cst_5 = arith.constant 0.000000e+00 : f32
    %7 = vector.broadcast %cst_5 : f32 to vector<128x128xf32>
    %8 = arith.cmpf oge, %6, %7 : vector<128x128xf32>
    %cst_6 = arith.constant 0.00999999977 : f32
    %9 = vector.broadcast %cst_6 : f32 to vector<128x128xf32>
    %10 = arith.mulf %9, %6 : vector<128x128xf32>
    %11 = arith.select %8, %6, %10 : vector<128x128xi1>, vector<128x128xf32>
    %c0_7 = arith.constant 0 : index
    %c0_8 = arith.constant 0 : index
    %12 = vector.load %arg4[%c0_7, %c0_8] : memref<128x64xf32, #tpu.memory_space<vmem>>, vector<128x64xf32>
    %cst_9 = arith.constant dense<0.000000e+00> : vector<128x64xf32>
    %13 = tpu.matmul %11, %12, %cst_9 {dimension_numbers = #tpu.dot_dimension_numbers<[1], [0], [0], [1], [0, 0, 1, 1], [], []>} : vector<128x128xf32>, vector<128x64xf32>, vector<128x64xf32> -> vector<128x64xf32>
    %c0_10 = arith.constant 0 : index
    %c0_11 = arith.constant 0 : index
    %14 = vector.load %arg5[%c0_10, %c0_11] : memref<1x64xf32, #tpu.memory_space<vmem>>, vector<1x64xf32>
    %15 = vector.broadcast %14 : vector<1x64xf32> to vector<128x64xf32>
    %16 = arith.addf %13, %15 : vector<128x64xf32>
    %cst_12 = arith.constant 0.000000e+00 : f32
    %17 = vector.broadcast %cst_12 : f32 to vector<128x64xf32>
    %18 = arith.cmpf oge, %16, %17 : vector<128x64xf32>
    %cst_13 = arith.constant 0.00999999977 : f32
    %19 = vector.broadcast %cst_13 : f32 to vector<128x64xf32>
    %20 = arith.mulf %19, %16 : vector<128x64xf32>
    %21 = arith.select %18, %16, %20 : vector<128x64xi1>, vector<128x64xf32>
    %c0_14 = arith.constant 0 : index
    %c0_15 = arith.constant 0 : index
    %22 = vector.load %arg6[%c0_14, %c0_15] : memref<1x64xf32, #tpu.memory_space<vmem>>, vector<1x64xf32>
    %cst_16 = arith.constant dense<0.000000e+00> : vector<1x128xf32>
    %23 = tpu.matmul %22, %21, %cst_16 {dimension_numbers = #tpu.dot_dimension_numbers<[1], [1], [0], [0], [0, 0, 1, 0], [], []>} : vector<1x64xf32>, vector<128x64xf32>, vector<1x128xf32> -> vector<1x128xf32>
    %c0_17 = arith.constant 0 : index
    %c0_18 = arith.constant 0 : index
    %24 = vector.load %arg7[%c0_17, %c0_18] : memref<1x1xf32, #tpu.memory_space<vmem>>, vector<1x1xf32>
    %25 = vector.broadcast %24 : vector<1x1xf32> to vector<1x128xf32>
    %26 = arith.addf %23, %25 : vector<1x128xf32>
    %27 = math.exp %26 : vector<1x128xf32>
    %28 = vector.shape_cast %27 : vector<1x128xf32> to vector<1x1x128xf32>
    %c0_19 = arith.constant 0 : index
    %c0_20 = arith.constant 0 : index
    %c0_21 = arith.constant 0 : index
    %29 = vector.load %arg8[%c0_19, %c0_20, %c0_21] : memref<1x1x128xf32, #tpu.memory_space<vmem>>, vector<1x1x128xf32>
    tpu.vector_store %arg8[%c0_19, %c0_20, %c0_21], %28 {strides = array<i32>} : memref<1x1x128xf32, #tpu.memory_space<vmem>>, vector<1x1x128xf32>,
    return
  }
  func.func @transform_0(%arg0: i32) -> (i32, i32) {
    %c0_i32 = arith.constant 0 : i32
    %c0_i32_0 = arith.constant 0 : i32
    return %arg0, %c0_i32 : i32, i32
  }
  func.func @transform_1(%arg0: i32) -> (i32, i32) {
    %c0_i32 = arith.constant 0 : i32
    %c0_i32_0 = arith.constant 0 : i32
    %c0_i32_1 = arith.constant 0 : i32
    return %c0_i32, %c0_i32_0 : i32, i32
  }
  func.func @transform_2(%arg0: i32) -> (i32, i32) {
    %c0_i32 = arith.constant 0 : i32
    %c0_i32_0 = arith.constant 0 : i32
    %c0_i32_1 = arith.constant 0 : i32
    return %c0_i32, %c0_i32_0 : i32, i32
  }
  func.func @transform_3(%arg0: i32) -> (i32, i32) {
    %c0_i32 = arith.constant 0 : i32
    %c0_i32_0 = arith.constant 0 : i32
    %c0_i32_1 = arith.constant 0 : i32
    return %c0_i32, %c0_i32_0 : i32, i32
  }
  func.func @transform_4(%arg0: i32) -> (i32, i32) {
    %c0_i32 = arith.constant 0 : i32
    %c0_i32_0 = arith.constant 0 : i32
    %c0_i32_1 = arith.constant 0 : i32
    return %c0_i32, %c0_i32_0 : i32, i32
  }
  func.func @transform_5(%arg0: i32) -> (i32, i32) {
    %c0_i32 = arith.constant 0 : i32
    %c0_i32_0 = arith.constant 0 : i32
    %c0_i32_1 = arith.constant 0 : i32
    return %c0_i32, %c0_i32_0 : i32, i32
  }
  func.func @transform_6(%arg0: i32) -> (i32, i32) {
    %c0_i32 = arith.constant 0 : i32
    %c0_i32_0 = arith.constant 0 : i32
    %c0_i32_1 = arith.constant 0 : i32
    return %c0_i32, %c0_i32_0 : i32, i32
  }
  func.func @transform_7(%arg0: i32) -> (i32, i32, i32) {
    %c0_i32 = arith.constant 0 : i32
    %c0_i32_0 = arith.constant 0 : i32
    %c0_i32_1 = arith.constant 0 : i32
    return %arg0, %c0_i32, %c0_i32_0 : i32, i32, i32
  }
}

</mosaic_0001>

<bundles_post_ra>
// kernel: tpu_custom_call.1
= control target key start
LH: loop header
LB: loop body
LE: loop exit
PB: predicated region body
PF: predicated region fallthrough
CT: control target
= control target key end

     0   :  { %s2183_s0 = inlined_call_operand.hbm [shape: f32[250,384], index: 0, kind: input, shape index: {}]   ;;  %s2184_s1 = inlined_call_operand.vmem [shape: bf16[384,128], index: 1, kind: input, shape index: {}]   ;;  %s2185_s2 = inlined_call_operand.vmem [shape: f32[1,128], index: 2, kind: input, shape index: {}]   ;;  %s2186_s3 = inlined_call_operand.vmem [shape: f32[128,64], index: 3, kind: input, shape index: {}]   ;;  %s2187_s4 = inlined_call_operand.vmem [shape: f32[1,64], index: 4, kind: input, shape index: {}]   ;;  %s2188_s5 = inlined_call_operand.vmem [shape: f32[1,64], index: 5, kind: input, shape index: {}]   ;;  %s2189_s6 = inlined_call_operand.<no memory space> [shape: f32[1,1], index: 6, kind: input, shape index: {}]   ;;  %s2190_s7 = inlined_call_operand.hbm [shape: f32[2,1,128], index: 7, kind: output, shape index: {}]  }
   0x1   :  { %v12_v0 = vstv %s2189_s6 }
   0x2   :  { %13 = vst [vmem:[#allocation2] sm:$0x1] %v12_v0 }
   0x3   :  { %14 = vsyncpa [#allocation4], 0 }
   0x4   :  { %16 = vsyncpa [#allocation4 + $0x1], 0 }
   0x5   :  { %17 = vsyncpa [#allocation5], 0 }
   0x6   :  { %19 = vsyncpa [#allocation5 + $0x1], 0  ;;  %s1775_s26 = smov 0   ;;  %s1777_s27 = smov 0  }
   0x7   :  { %s1779_s28 = smov 0   ;;  %s1781_s29 = smov 0  }
   0x8 LB: > { %s1796_s6 = sadd.s32 4294967295, %s1723_s29   ;;  %s1245_s30 = sadd.s32 4294967294, %s1723_s29   ;;  %s1723_s29 = sphi %s1781_s29, %s2204_s29   ;;  %s1719_s28 = sphi %s1779_s28, %s2203_s28   ;;  %s1715_s27 = sphi %s1777_s27, %s2202_s27   ;;  %s1711_s26 = sphi %s1775_s26, %s2201_s26  }
   0x9   : > { %s1800_s8 = sadd.s32 1, %s1723_s29   ;;  %s32_s9 = sadd.s32 1, %s1719_s28 }
   0xa   : > { %s29_s10 = ssub.s32 %s1723_s29, %s1800_s8  ;;  %p39_p0 = scmp.ne.s32.totalorder %s1719_s28, %s1715_s27 }
   0xb   : > { %p30_p1 = scmp.eq.s32.totalorder %s29_s10, 0  ;;  %p40_p2 = scmp.eq.s32.totalorder %s1723_s29, 0 }
   0xc   : > { %p45_p3 = scmp.ne.s32.totalorder %s1715_s27, %s1711_s26  ;;  %p46_p4 = scmp.eq.s32.totalorder %s1796_s6, 0 }
   0xd   : > { %s1812_s11 = scalar_select %p30_p1, %s1719_s28, %s32_s9  }
   0xe   : > { %p41_p5 = por %p40_p2, %p39_p0  ;;  %p1814_p6 = por %p46_p4, %p45_p3 }
   0xf   : > { %p195_p7 = scmp.eq.s32.totalorder %s1796_s6, 1  ;;  %p201_p8 = scmp.eq.s32.totalorder %s1245_s30, 1 }
  0x10   : > { %s2193_s12 = scalar_select %p1814_p6, 1, 0 }
  0x11   : > { %p1565_p10 = scmp.lt.s32.totalorder %s1723_s29, 2  ;;  %p1821_p11 = por %p195_p7, %p39_p0 }
  0x12   : > { %p1825_p12 = por %p201_p8, %p45_p3  ;;  %s239_s15 = sand.u32 1, %s1719_s28  }
  0x13   : > { %s2194_s13 = scalar_select %p1821_p11, 1, 0 }
  0x14   : > { %s2195_s14 = scalar_select %p1825_p12, 1, 0 }
  0x15   : > { %s1551_s16 = smul.u32 6144, %s1723_s29  ;;  %p1836_p13 = pnand %p1565_p10, %p41_p5 }
  0x16   : > { %s1550_s17 = smul.u32 384, %s239_s15  ;;  %s1842_s24 = scalar_lea.sflag [#allocation4], %s239_s15 }
  0x17   : > { %s1834_s20 = scalar_lea.hbm %s2183_s0, %s1551_s16  ;;  %p1633_p1 = pneg %p1836_p13 }
  0x18   : > { %s243_s22 = scalar_lea.vmem [#allocation3], %s1550_s17  ;;  %s1631_s25 = scalar_lea.hbm %s1834_s20, 6144 }
  0x19   : > { %s251_s23 = sshll.u32 %s243_s22, 4  ;;  %p1632_p0 = scmp.ne.s32.totalorder %s1834_s20, %s1631_s25  ;;  %s1840_s23 = int_to_ptr.vmem [resolvable:$true] %s251_s23 }
  0x1a   : > { %s1636_s10 = scalar_lea.hbm %s2183_s0, 12288  ;;  %p1637_p4 = scmp.lt.s32.totalorder %s1834_s20, %s2183_s0 }
  0x1b   : > { %p1634_p2 = pnand %p1633_p1, %p1632_p0  ;;  %p1638_p5 = scmp.lt.s32.totalorder %s1636_s10, %s1631_s25 }
  0x1d   : > { %p1635_p3 = pneg %p1634_p2  ;;  %p1639_p7 = por %p1638_p5, %p1637_p4 }
  0x1f   : > { %p1640_p8 = pnand %p1639_p7, %p1635_p3 }
  0x21   : > { %1643 = shalt.err (!%p1640_p8)
}
  0x22   : > { %s1644_s15 = scalar_lea.vmem %s1840_s23, 6144  ;;  %s1725_s17 = smov [#allocation3]  }
  0x23   : > { %p1645_p10 = scmp.ne.s32.totalorder %s1840_s23, %s1644_s15  ;;  %s1649_s19 = sshll.u32 %s1725_s17, 4  ;;  %s1650_s19 = int_to_ptr.vmem [resolvable:$false] %s1649_s19 }
  0x24   : > { %s1651_s22 = scalar_lea.vmem %s1650_s19, 12288  ;;  %p1652_p2 = scmp.lt.s32.totalorder %s1840_s23, %s1650_s19 }
  0x25   : > { %p1647_p9 = pnand %p1645_p10, %p1633_p1  ;;  %p1653_p12 = scmp.lt.s32.totalorder %s1651_s22, %s1644_s15 }
  0x27   : > { %p1648_p0 = pneg %p1647_p9  ;;  %p1654_p11 = por %p1653_p12, %p1652_p2 }
  0x29   : > { %p1655_p6 = pnand %p1654_p11, %p1648_p0 }
  0x2b   : > { %1658 = shalt.err (!%p1655_p6)
}
  0x2c   : > { %s1726_s25 = smov 384   ;;  %s1727_s30 = smov 24  }
  0x2d   : > { %1560 = dma.hbm_to_vmem [thread:$0]  (!%p1836_p13), %s1834_s20, 6144, %s1840_s23, %s1842_s24, %s1726_s25, %s1726_s25, %s1727_s30  }
  0x2e   : > { %p1251_p9 = scmp.ge.s32.totalorder %s1723_s29, 1  ;;  %p259_p1 = scmp.lt.s32.totalorder %s1723_s29, 3 }
  0x30   : > { %p260_p3 = pnand %p1251_p9, %p259_p1 }
  0x31   : > { %s1866_s9 = sand.u32 (!%p260_p3), 1, %s1715_s27   ;;  %p2197_p6 = scmp.ne.s32.totalorder (!%p260_p3), %s2193_s12, 0 }
  0x32   : > { %263 = sbr.rel (%p260_p3) target bundleno = 838 (0x346), region = 48  ;;  %s266_s16 = scalar_lea.sflag (!%p260_p3), [#allocation4], %s1866_s9 }
  0x33   : > { %s1552_s10 = smul.u32 (!%p260_p3), 384, %s1866_s9 }
  0x35   : > { %s1870_s18 = scalar_lea.vmem (!%p260_p3), [#allocation3], %s1552_s10 }
  0x37   : > { %1702 = dma.done.wait (%p2197_p6), %s266_s16, 6144  }
  0x38   : > { %1704 = vsyncadd (%p2197_p6), %s266_s16, 4294961152  ;;  %v1605_v1 = vld [vmem:[%s2184_s1 + $0x78] sm:$0xff]   ;;  %v1607_v3 = vld [vmem:[%s2184_s1 + $0x70] sm:$0xff]   ;;  %s1295_s19 = sshll.u32 %s1796_s6, 4  ;;  %s298_s22 = scalar_lea.vmem [#allocation6], %s1866_s9 }
  0x39   : > { %v1606_v2 = vld [vmem:[%s2184_s1 + $0x38] sm:$0xff]   ;;  %1298 = vmatprep.subr.bf16.mxu0 %v1605_v1  ;;  %v1609_v5 = vld [vmem:[%s2184_s1 + $0x30] sm:$0xff]   ;;  %v1610_v6 = vld [vmem:[%s2184_s1 + $0x68] sm:$0xff]   ;;  %s1179_s12 = sshll.u32 %s298_s22, 4  ;;  %s2146_s10 = scalar_lea.hbm %s2190_s7, %s1295_s19  ;;  %s1180_s12 = int_to_ptr.vmem [resolvable:$true] %s1179_s12 }
  0x3a   : > { %1299 = vmatpush3.bf16.msra.mxu0 %v1606_v2  ;;  %v1608_v4 = vld [vmem:[%s2184_s1 + $0xb8] sm:$0xff]   ;;  %v1611_v7 = vld [vmem:[%s2184_s1 + $0xb0] sm:$0xff]   ;;  %v1612_v8 = vld [vmem:[%s2184_s1 + $0x28] sm:$0xff]   ;;  %s1167_s16 = scalar_lea.sflag [#allocation5], %s1866_s9  ;;  %s1659_s20 = scalar_lea.vmem %s1180_s12, 16 }
  0x3b   : > { %1300 = vmatprep.subr.bf16.mxu0 %v1607_v3  ;;  %1427 = vmatprep.subr.bf16.mxu1 %v1608_v4  ;;  %v1613_v9 = vld [vmem:[%s2184_s1 + $0x60] sm:$0xff]   ;;  %v1614_v10 = vld [vmem:[%s2184_s1 + $0xa8] sm:$0xff]   ;;  %v1616_v12 = vld [vmem:[%s2184_s1 + $0x58] sm:$0xff]   ;;  %p1660_p11 = scmp.ne.s32.totalorder %s1180_s12, %s1659_s20  ;;  %p2198_p12 = scmp.ne.s32.totalorder %s2194_s13, 0 }
  0x3c   : > { %1428 = vmatpush3.bf16.msra.mxu1 %v1608_v4  ;;  %v1615_v11 = vld [vmem:[%s2184_s1 + $0x20] sm:$0xff]   ;;  %v1618_v14 = vld [vmem:[%s2184_s1 + $0x18] sm:$0xff]   ;;  %v1619_v16 = vld [vmem:[%s2184_s1 + $0x50] sm:$0xff]   ;;  %s1731_s21 = smov [#allocation6]  }
  0x3d   : > { %1429 = vmatprep.subr.bf16.mxu1 %v1611_v7  ;;  %v1617_v13 = vld [vmem:[%s2184_s1 + $0xa0] sm:$0xff]   ;;  %v1620_v15 = vld [vmem:[%s2184_s1 + $0x98] sm:$0xff]   ;;  %v1621_v17 = vld [vmem:[%s2184_s1 + $0x10] sm:$0xff]   ;;  %p1661_p13 = pnand %p1660_p11, %p2198_p12  ;;  %s1663_s23 = sshll.u32 %s1731_s21, 4  ;;  %s1664_s23 = int_to_ptr.vmem [resolvable:$false] %s1663_s23 }
  0x3e   : > { %1301 = vmatpush3.bf16.msra.mxu0 %v1609_v5  ;;  %v1623_v18 = vld [vmem:[%s2184_s1 + $0x90] sm:$0xff]   ;;  %v1622_v19 = vld [vmem:[%s2184_s1 + $0x48] sm:$0xff]   ;;  %v1625_v24 = vld [vmem:[%s2184_s1 + $0x40] sm:$0xff]   ;;  %s1665_s6 = scalar_lea.vmem %s1664_s23, 32  ;;  %p1666_p5 = scmp.lt.s32.totalorder %s1180_s12, %s1664_s23 }
  0x3f   : > { %1302 = vmatprep.subr.bf16.mxu0 %v1610_v6  ;;  %v1624_v20 = vld [vmem:[%s2184_s1 + $0x8] sm:$0xff]   ;;  %v303_v26 = vld [vmem:[%s1870_s18 + $0x10] sm:$0xff]  ;;  %v1627_v28 = vld [vmem:[%s2184_s1] sm:$0xff]   ;;  %p1662_p4 = pneg %p1661_p13  ;;  %p1667_p7 = scmp.lt.s32.totalorder %s1665_s6, %s1659_s20 }
  0x40   : > { %1430 = vmatpush3.bf16.msra.mxu1 %v1611_v7  ;;  %v1626_v21 = vld [vmem:[%s2184_s1 + $0x88] sm:$0xff]   ;;  %v304_v31 = vld [vmem:[%s1870_s18 + $0x18] sm:$0xff]  ;;  %v311_v34 = vld [vmem:[%s1870_s18 + $0x50] sm:$0xff] }
  0x41   : > { %1431 = vmatprep.subr.bf16.mxu1 %v1614_v10  ;;  %v302_v22 = vld [vmem:[%s1870_s18 + $0x8] sm:$0xff]  ;;  %v305_v23 = vld [vmem:[%s1870_s18 + $0x20] sm:$0xff]  ;;  %v308_v33 = vld [vmem:[%s1870_s18 + $0x38] sm:$0xff]  ;;  %p1668_p8 = por %p1667_p7, %p1666_p5 }
  0x42   : > { %1303 = vmatpush3.bf16.msra.mxu0 %v1612_v8  ;;  %v350_v25 = vpack.c.bf16 %v305_v23, %v302_v22  ;;  %v306_v27 = vld [vmem:[%s1870_s18 + $0x28] sm:$0xff]  ;;  %v301_v30 = vld [vmem:[%s1870_s18] sm:$0xff]  ;;  %v312_v37 = vld [vmem:[%s1870_s18 + $0x58] sm:$0xff]  ;;  %v353_v38 = vpack.c.bf16 %v311_v34, %v308_v33 }
  0x43   : > { %1304 = vmatprep.subr.bf16.mxu0 %v1613_v9  ;;  %v351_v29 = vpack.c.bf16 %v306_v27, %v303_v26  ;;  %v1628_v32 = vld [vmem:[%s2184_s1 + $0x80] sm:$0xff]   ;;  %v349_v35 = vpack.c.bf16 %v304_v31, %v301_v30  ;;  %v315_v39 = vld [vmem:[%s1870_s18 + $0x70] sm:$0xff]  ;;  %v318_v40 = vld [vmem:[%s1870_s18 + $0x88] sm:$0xff]  ;;  %p1669_p10 = pnand %p1668_p8, %p1662_p4 }
  0x44   : > { %1432 = vmatpush3.bf16.msra.mxu1 %v1614_v10  ;;  %604 = vmatprep.mubr.bf16.mxu0 %v350_v25  ;;  %v309_v36 = vld [vmem:[%s1870_s18 + $0x40] sm:$0xff]  ;;  %v357_v42 = vpack.c.bf16 %v318_v40, %v315_v39  ;;  %v307_v43 = vld [vmem:[%s1870_s18 + $0x30] sm:$0xff]  ;;  %v310_v44 = vld [vmem:[%s1870_s18 + $0x48] sm:$0xff] }
  0x45   : > { %1433 = vmatprep.subr.bf16.mxu1 %v1617_v13  ;;  %1443 = vmatprep.mubr.bf16.mxu1 %v351_v29  ;;  %v354_v41 = vpack.c.bf16 %v312_v37, %v309_v36  ;;  %v314_v45 = vld [vmem:[%s1870_s18 + $0x68] sm:$0xff]  ;;  %v317_v46 = vld [vmem:[%s1870_s18 + $0x80] sm:$0xff]  ;;  %v352_v47 = vpack.c.bf16 %v310_v44, %v307_v43  ;;  %v324_v49 = vld [vmem:[%s1870_s18 + $0xb8] sm:$0xff] }
  0x46   : > { %1305 = vmatpush3.bf16.msra.mxu0 %v1615_v11  ;;  %v321_v48 = vld [vmem:[%s1870_s18 + $0xa0] sm:$0xff]  ;;  %v356_v50 = vpack.c.bf16 %v317_v46, %v314_v45  ;;  %v327_v51 = vld [vmem:[%s1870_s18 + $0xd0] sm:$0xff]  ;;  %v330_v52 = vld [vmem:[%s1870_s18 + $0xe8] sm:$0xff] }
  0x47   : > { %1306 = vmatprep.subr.bf16.mxu0 %v1616_v12  ;;  %v829_v53 = vld [vmem:[%s2186_s3 + $0x78] sm:$0xff]  ;;  %v828_v54 = vld [vmem:[%s2186_s3 + $0x70] sm:$0xff]  ;;  %v360_v55 = vpack.c.bf16 %v324_v49, %v321_v48  ;;  %v363_v56 = vpack.c.bf16 %v330_v52, %v327_v51  ;;  %v827_v57 = vld [vmem:[%s2186_s3 + $0x68] sm:$0xff] }
  0x48   : > { %1434 = vmatpush3.bf16.msra.mxu1 %v1617_v13  ;;  %v313_v58 = vld [vmem:[%s1870_s18 + $0x60] sm:$0xff]  ;;  %v316_v59 = vld [vmem:[%s1870_s18 + $0x78] sm:$0xff]  ;;  %v323_v61 = vld [vmem:[%s1870_s18 + $0xb0] sm:$0xff] }
  0x49   : > { %1435 = vmatprep.subr.bf16.mxu1 %v1620_v15  ;;  %v320_v60 = vld [vmem:[%s1870_s18 + $0x98] sm:$0xff]  ;;  %v355_v63 = vpack.c.bf16 %v316_v59, %v313_v58  ;;  %v333_v0 = vld [vmem:[%s1870_s18 + $0x100] sm:$0xff]  ;;  %v339_v4 = vld [vmem:[%s1870_s18 + $0x130] sm:$0xff] }
  0x4a   : > { %1307 = vmatpush3.bf16.msra.mxu0 %v1618_v14  ;;  %v826_v62 = vld [vmem:[%s2186_s3 + $0x60] sm:$0xff]  ;;  %v825_v2 = vld [vmem:[%s2186_s3 + $0x58] sm:$0xff]  ;;  %v359_v3 = vpack.c.bf16 %v323_v61, %v320_v60  ;;  %v342_v5 = vld [vmem:[%s1870_s18 + $0x148] sm:$0xff] }
  0x4b   : > { %1308 = vmatprep.subr.bf16.mxu0 %v1619_v16  ;;  %v336_v1 = vld [vmem:[%s1870_s18 + $0x118] sm:$0xff]  ;;  %v824_v6 = vld [vmem:[%s2186_s3 + $0x50] sm:$0xff]  ;;  %v369_v8 = vpack.c.bf16 %v342_v5, %v339_v4  ;;  %v823_v9 = vld [vmem:[%s2186_s3 + $0x48] sm:$0xff] }
  0x4c   : > { %1436 = vmatpush3.bf16.msra.mxu1 %v1620_v15  ;;  %v366_v7 = vpack.c.bf16 %v336_v1, %v333_v0  ;;  %v319_v10 = vld [vmem:[%s1870_s18 + $0x90] sm:$0xff]  ;;  %v322_v11 = vld [vmem:[%s1870_s18 + $0xa8] sm:$0xff]  ;;  %v329_v13 = vld [vmem:[%s1870_s18 + $0xe0] sm:$0xff] }
  0x4d   : > { %1437 = vmatprep.subr.bf16.mxu1 %v1623_v18  ;;  %v326_v12 = vld [vmem:[%s1870_s18 + $0xc8] sm:$0xff]  ;;  %v822_v14 = vld [vmem:[%s2186_s3 + $0x40] sm:$0xff]  ;;  %v358_v15 = vpack.c.bf16 %v322_v11, %v319_v10  ;;  %v335_v23 = vld [vmem:[%s1870_s18 + $0x110] sm:$0xff] }
  0x4e   : > { %1309 = vmatpush3.bf16.msra.mxu0 %v1621_v17  ;;  %v345_v16 = vld [vmem:[%s1870_s18 + $0x160] sm:$0xff]  ;;  %v348_v17 = vld [vmem:[%s1870_s18 + $0x178] sm:$0xff]  ;;  %v331_v26 = vld [vmem:[%s1870_s18 + $0xf0] sm:$0xff] }
  0x4f   : > { %1310 = vmatprep.subr.bf16.mxu0 %v1622_v19  ;;  %v372_v19 = vpack.c.bf16 %v348_v17, %v345_v16  ;;  %v332_v22 = vld [vmem:[%s1870_s18 + $0xf8] sm:$0xff]  ;;  %v334_v27 = vld [vmem:[%s1870_s18 + $0x108] sm:$0xff]  ;;  %v341_v29 = vld [vmem:[%s1870_s18 + $0x140] sm:$0xff] }
  0x50   : > { %1438 = vmatpush3.bf16.msra.mxu1 %v1623_v18  ;;  %v362_v18 = vpack.c.bf16 %v329_v13, %v326_v12  ;;  %v365_v25 = vpack.c.bf16 %v335_v23, %v332_v22  ;;  %v364_v30 = vpack.c.bf16 %v334_v27, %v331_v26  ;;  %v340_v33 = vld [vmem:[%s1870_s18 + $0x138] sm:$0xff]  ;;  %v346_v39 = vld [vmem:[%s1870_s18 + $0x168] sm:$0xff] }
  0x51   : > { %1439 = vmatprep.subr.bf16.mxu1 %v1626_v21  ;;  %v344_v34 = vld [vmem:[%s1870_s18 + $0x158] sm:$0xff]  ;;  %v819_v43 = vld [vmem:[%s2186_s3 + $0x28] sm:$0xff]  ;;  %v816_v46 = vld [vmem:[%s2186_s3 + $0x10] sm:$0xff] }
  0x52   : > { %1311 = vmatpush3.bf16.msra.mxu0 %v1624_v20  ;;  %v325_v20 = vld [vmem:[%s1870_s18 + $0xc0] sm:$0xff]  ;;  %v817_v45 = vld [vmem:[%s2186_s3 + $0x18] sm:$0xff]  ;;  %v2047_v51 = vld [vmem:[%s2185_s2] ss:$0 sm:$0xff] }
  0x53   : > { %1312 = vmatprep.subr.bf16.mxu0 %v1625_v24  ;;  %v818_v44 = vld [vmem:[%s2186_s3 + $0x20] sm:$0xff] }
  0x54   : > { %1440 = vmatpush3.bf16.msra.mxu1 %v1626_v21  ;;  %v328_v21 = vld [vmem:[%s1870_s18 + $0xd8] sm:$0xff] }
  0x55   : > { %1441 = vmatprep.subr.bf16.mxu1 %v1628_v32  ;;  %v361_v24 = vpack.c.bf16 %v328_v21, %v325_v20  ;;  %v814_v48 = vld [vmem:[%s2186_s3] sm:$0xff] }
  0x56   : > { %1313 = vmatpush3.bf16.msra.mxu0 %v1627_v28  ;;  %v338_v28 = vld [vmem:[%s1870_s18 + $0x128] sm:$0xff] }
  0x57   : > { %v368_v31 = vpack.c.bf16 %v341_v29, %v338_v28 }
  0x58   : > { %1442 = vmatpush3.bf16.msra.mxu1 %v1628_v32  ;;  %v337_v32 = vld [vmem:[%s1870_s18 + $0x120] sm:$0xff] }
  0x59   : > { %605 = vmatmul.mubr.bf16.vlgmr.msra.gmra.mxu0 %v349_v35  ;;  %1459 = vmatprep.subr.mxu1 %v829_v53  ;;  %v347_v35 = vld [vmem:[%s1870_s18 + $0x170] sm:$0xff]  ;;  %v367_v36 = vpack.c.bf16 %v340_v33, %v337_v32 }
  0x5a   : > { %612 = vmatprep.mubr.bf16.mxu0 %v353_v38  ;;  %v371_v37 = vpack.c.bf16 %v347_v35, %v344_v34  ;;  %v343_v38 = vld [vmem:[%s1870_s18 + $0x150] sm:$0xff] }
  0x5b   : > { %1444 = vmatmul.mubr.bf16.vlgmr.msra.gmra.mxu1 %v354_v41  ;;  %v370_v40 = vpack.c.bf16 %v346_v39, %v343_v38  ;;  %v821_v41 = vld [vmem:[%s2186_s3 + $0x38] sm:$0xff] }
  0x5c   : > { %1447 = vmatprep.mubr.bf16.mxu1 %v357_v42  ;;  %1460 = vmatpush3.msra.mxu1 %v829_v53  ;;  %v820_v42 = vld [vmem:[%s2186_s3 + $0x30] sm:$0xff] }
  0x5d   : > { %1461 = vmatprep.subr.mxu1 %v828_v54 }
  0x5e   : > { %1462 = vmatpush3.msra.mxu1 %v828_v54 }
  0x5f   : > { %1463 = vmatprep.subr.mxu1 %v827_v57 }
  0x60   : > { %1464 = vmatpush3.msra.mxu1 %v827_v57 }
  0x61   : > { %613 = vmatmul.mubr.bf16.gmra.mxu0 %v352_v47  ;;  %1465 = vmatprep.subr.mxu1 %v826_v62  ;;  %v815_v47 = vld [vmem:[%s2186_s3 + $0x8] sm:$0xff] }
  0x62   : > { %620 = vmatprep.mubr.bf16.mxu0 %v356_v50  ;;  %1466 = vmatpush3.msra.mxu1 %v826_v62 }
  0x63   : > { %1448 = vmatmul.mubr.bf16.gmra.mxu1 %v360_v55  ;;  %1467 = vmatprep.subr.mxu1 %v825_v2 }
  0x64   : > { %1451 = vmatprep.mubr.bf16.mxu1 %v363_v56  ;;  %1468 = vmatpush3.msra.mxu1 %v825_v2 }
  0x65   : > { %1469 = vmatprep.subr.mxu1 %v824_v6 }
  0x66   : > { %1470 = vmatpush3.msra.mxu1 %v824_v6 }
  0x67   : > { %1471 = vmatprep.subr.mxu1 %v823_v9 }
  0x68   : > { %1472 = vmatpush3.msra.mxu1 %v823_v9 }
  0x69   : > { %621 = vmatmul.mubr.bf16.gmra.mxu0 %v355_v63  ;;  %1473 = vmatprep.subr.mxu1 %v822_v14 }
  0x6a   : > { %628 = vmatprep.mubr.bf16.mxu0 %v359_v3  ;;  %1474 = vmatpush3.msra.mxu1 %v822_v14 }
  0x6b   : > { %1452 = vmatmul.mubr.bf16.gmra.mxu1 %v366_v7  ;;  %1475 = vmatprep.subr.mxu1 %v821_v41 }
  0x6c   : > { %1455 = vmatprep.mubr.bf16.mxu1 %v369_v8  ;;  %1476 = vmatpush3.msra.mxu1 %v821_v41 }
  0x6d   : > { %1477 = vmatprep.subr.mxu1 %v820_v42 }
  0x6e   : > { %1478 = vmatpush3.msra.mxu1 %v820_v42 }
  0x6f   : > { %1479 = vmatprep.subr.mxu1 %v819_v43 }
  0x70   : > { %1480 = vmatpush3.msra.mxu1 %v819_v43 }
  0x71   : > { %629 = vmatmul.mubr.bf16.gmra.mxu0 %v358_v15  ;;  %1481 = vmatprep.subr.mxu1 %v818_v44 }
  0x72   : > { %636 = vmatprep.mubr.bf16.mxu0 %v362_v18  ;;  %1482 = vmatpush3.msra.mxu1 %v818_v44 }
  0x73   : > { %1456 = vmatmul.mubr.bf16.gmra.mxu1 %v372_v19  ;;  %1483 = vmatprep.subr.mxu1 %v817_v45 }
  0x74   : > { %1484 = vmatpush3.msra.mxu1 %v817_v45 }
  0x75   : > { %1485 = vmatprep.subr.mxu1 %v816_v46 }
  0x76   : > { %1486 = vmatpush3.msra.mxu1 %v816_v46 }
  0x77   : > { %1487 = vmatprep.subr.mxu1 %v815_v47 }
  0x78   : > { %1488 = vmatpush3.msra.mxu1 %v815_v47 }
  0x79   : > { %637 = vmatmul.mubr.bf16.gmra.mxu0 %v361_v24  ;;  %1489 = vmatprep.subr.mxu1 %v814_v48 }
  0x7a   : > { %644 = vmatprep.mubr.bf16.mxu0 %v365_v25  ;;  %1490 = vmatpush3.msra.mxu1 %v814_v48 }
  0x81   : > { %645 = vmatmul.mubr.bf16.gmra.mxu0 %v364_v30 }
  0x82   : > { %652 = vmatprep.mubr.bf16.mxu0 %v368_v31 }
  0x89   : > { %653 = vmatmul.mubr.bf16.gmra.mxu0 %v367_v36 }
  0x8a   : > { %660 = vmatprep.mubr.bf16.mxu0 %v371_v37 }
  0x91   : > { %661 = vmatmul.mubr.bf16.gmra.mxu0 %v370_v40 }
 0x119   : > { %v1314_v49 = vpop.f32.mrf.mxu0 }
 0x11b   : > { %v1315_v50 = vpop.f32.mrf.mxu0  ;;  %v1445_v53 = vpop.f32.mrf.mxu1 }
 0x11c   : > { %v1316_v52 = vadd.f32 %v1315_v50, %v1314_v49 }
 0x11d   : > { %v1317_v54 = vpop.f32.mrf.mxu0  ;;  %v703_v56 = vpop.f32.mrf.mxu1 }
 0x11e   : > { %v607_v55 = vadd.f32 %v1316_v52, %v2047_v51 }
 0x11f   : > { %v1318_v57 = vpop.f32.mrf.mxu0  ;;  %v1446_v60 = vpop.f32.mrf.mxu1 }
 0x120   : > { %v1319_v58 = vadd.f32 %v1318_v57, %v1317_v54  ;;  %v704_v59 = vadd.f32 %v703_v56, %v607_v55 }
 0x121   : > { %v1320_v61 = vpop.f32.mrf.mxu0  ;;  %v706_v0 = vpop.f32.mrf.mxu1 }
 0x122   : > { %v782_v62 = vmul.f32 0.01, %v704_v59  ;;  %v610_v63 = vadd.f32 %v1319_v58, %v2047_v51  ;;  %vm766_vm0 = vcmp.ge.f32.partialorder %v704_v59, 0.0 }
 0x123   : > { %v1321_v1 = vpop.f32.mrf.mxu0  ;;  %v1449_v6 = vpop.f32.mrf.mxu1 }
 0x124   : > { %v1322_v2 = vadd.f32 %v1321_v1, %v1320_v61  ;;  %v707_v3 = vadd.f32 %v706_v0, %v610_v63  ;;  %v798_v4 = vsel %vm766_vm0, %v704_v59, %v782_v62  ;;  %vm1729_vm0 = vmmov 0  }
 0x125   : > { %v1323_v5 = vpop.f32.mrf.mxu0  ;;  %1491 = vmatprep.mubr.f32.mxu1 %v798_v4  ;;  %v719_v14 = vpop.f32.mrf.mxu1 }
 0x126   : > { %v615_v7 = vadd.f32 %v1322_v2, %v2047_v51  ;;  %vm767_vm1 = vcmp.ge.f32.partialorder %v707_v3, 0.0  ;;  %v783_v8 = vmul.f32 0.01, %v707_v3 }
 0x127   : > { %v1324_v9 = vpop.f32.mrf.mxu0  ;;  %v1450_v22 = vpop.f32.mrf.mxu1 }
 0x128   : > { %v712_v10 = vadd.f32 %v1445_v53, %v615_v7  ;;  %v799_v11 = vsel %vm767_vm1, %v707_v3, %v783_v8  ;;  %v1325_v12 = vadd.f32 %v1324_v9, %v1323_v5 }
 0x129   : > { %v1326_v13 = vpop.f32.mrf.mxu0  ;;  %1492 = vmatmul.mubr.f32.vlgmr.msra.gmra.mxu1 %v799_v11  ;;  %v722_v30 = vpop.f32.mrf.mxu1 }
 0x12a   : > { %v618_v15 = vadd.f32 %v1325_v12, %v2047_v51  ;;  %vm768_vm2 = vcmp.ge.f32.partialorder %v712_v10, 0.0  ;;  %v784_v16 = vmul.f32 0.01, %v712_v10 }
 0x12b   : > { %v1327_v17 = vpop.f32.mrf.mxu0  ;;  %v1453_v38 = vpop.f32.mrf.mxu1 }
 0x12c   : > { %v715_v18 = vadd.f32 %v1446_v60, %v618_v15  ;;  %v1328_v19 = vadd.f32 %v1327_v17, %v1326_v13  ;;  %v800_v20 = vsel %vm768_vm2, %v712_v10, %v784_v16  ;;  %vm1041_vm2 = vcmask 523264  }
 0x12d   : > { %v1329_v21 = vpop.f32.mrf.mxu0  ;;  %1494 = vmatprep.mubr.f32.mxu1 %v800_v20  ;;  %v735_v46 = vpop.f32.mrf.mxu1 }
 0x12e   : > { %v623_v23 = vadd.f32 %v1328_v19, %v2047_v51  ;;  %vm769_vm3 = vcmp.ge.f32.partialorder %v715_v18, 0.0  ;;  %v785_v24 = vmul.f32 0.01, %v715_v18 }
 0x12f   : > { %v1330_v25 = vpop.f32.mrf.mxu0  ;;  %v1454_v55 = vpop.f32.mrf.mxu1 }
 0x130   : > { %v1331_v26 = vadd.f32 %v1330_v25, %v1329_v21  ;;  %v720_v27 = vadd.f32 %v719_v14, %v623_v23  ;;  %v801_v28 = vsel %vm769_vm3, %v715_v18, %v785_v24 }
 0x131   : > { %v1332_v29 = vpop.f32.mrf.mxu0  ;;  %1495 = vmatmul.mubr.f32.gmra.mxu1 %v801_v28  ;;  %v738_v63 = vpop.f32.mrf.mxu1 }
 0x132   : > { %v786_v31 = vmul.f32 0.01, %v720_v27  ;;  %v626_v32 = vadd.f32 %v1331_v26, %v2047_v51  ;;  %vm770_vm4 = vcmp.ge.f32.partialorder %v720_v27, 0.0 }
 0x133   : > { %v1333_v33 = vpop.f32.mrf.mxu0  ;;  %v1457_v10 = vpop.f32.mrf.mxu1 }
 0x134   : > { %v1334_v34 = vadd.f32 %v1333_v33, %v1332_v29  ;;  %v723_v35 = vadd.f32 %v722_v30, %v626_v32  ;;  %v802_v36 = vsel %vm770_vm4, %v720_v27, %v786_v31 }
 0x135   : > { %v1335_v37 = vpop.f32.mrf.mxu0  ;;  %1497 = vmatprep.mubr.f32.mxu1 %v802_v36  ;;  %v751_v18 = vpop.f32.mrf.mxu1 }
 0x136   : > { %v631_v39 = vadd.f32 %v1334_v34, %v2047_v51  ;;  %v787_v40 = vmul.f32 0.01, %v723_v35  ;;  %vm771_vm5 = vcmp.ge.f32.partialorder %v723_v35, 0.0 }
 0x137   : > { %v1336_v41 = vpop.f32.mrf.mxu0  ;;  %v1458_v26 = vpop.f32.mrf.mxu1 }
 0x138   : > { %v728_v42 = vadd.f32 %v1449_v6, %v631_v39  ;;  %v1337_v43 = vadd.f32 %v1336_v41, %v1335_v37  ;;  %v803_v44 = vsel %vm771_vm5, %v723_v35, %v787_v40 }
 0x139   : > { %v1338_v45 = vpop.f32.mrf.mxu0  ;;  %1498 = vmatmul.mubr.f32.gmra.mxu1 %v803_v44  ;;  %v754_v33 = vpop.f32.mrf.mxu1 }
 0x13a   : > { %v634_v47 = vadd.f32 %v1337_v43, %v2047_v51  ;;  %vm772_vm6 = vcmp.ge.f32.partialorder %v728_v42, 0.0  ;;  %v788_v48 = vmul.f32 0.01, %v728_v42 }
 0x13b   : > { %v1339_v49 = vpop.f32.mrf.mxu0 }
 0x13c   : > { %v731_v50 = vadd.f32 %v1450_v22, %v634_v47  ;;  %v1340_v52 = vadd.f32 %v1339_v49, %v1338_v45  ;;  %v804_v53 = vsel %vm772_vm6, %v728_v42, %v788_v48 }
 0x13d   : > { %v1341_v54 = vpop.f32.mrf.mxu0  ;;  %1500 = vmatprep.mubr.f32.mxu1 %v804_v53  ;;  %v1031_v53 = vld [vmem:[#allocation2] sm:$0x1] }
 0x13e   : > { %v639_v56 = vadd.f32 %v1340_v52, %v2047_v51  ;;  %vm773_vm7 = vcmp.ge.f32.partialorder %v731_v50, 0.0  ;;  %v789_v57 = vmul.f32 0.01, %v731_v50  ;;  %v1728_v52 = vmov 0.0  }
 0x13f   : > { %v1342_v58 = vpop.f32.mrf.mxu0  ;;  %1515 = vmatprep.subr.mxu0 %v1728_v52  ;;  %1547 = vmatprep.mubr.msk.f32.mxu0 %vm1729_vm0, %v1728_v52 }
 0x140   : > { %v1343_v59 = vadd.f32 %v1342_v58, %v1341_v54  ;;  %v736_v60 = vadd.f32 %v735_v46, %v639_v56  ;;  %v805_v61 = vsel %vm773_vm7, %v731_v50, %v789_v57  ;;  %v1730_v54 = vmov 0  }
 0x141   : > { %v1344_v62 = vpop.f32.mrf.mxu0  ;;  %1501 = vmatmul.mubr.f32.gmra.mxu1 %v805_v61  ;;  %1604 = vset.pattern.permute.xlu0 %v1730_v54 }
 0x142   : > { %v790_v0 = vmul.f32 0.01, %v736_v60  ;;  %v642_v1 = vadd.f32 %v1343_v59, %v2047_v51  ;;  %vm774_vm8 = vcmp.ge.f32.partialorder %v736_v60, 0.0  ;;  %1034 = vperm.xlu0 %1604, %v1031_v53  }
 0x143   : > { %v1345_v2 = vpop.f32.mrf.mxu0 }
 0x144   : > { %v1346_v3 = vadd.f32 %v1345_v2, %v1344_v62  ;;  %v739_v4 = vadd.f32 %v738_v63, %v642_v1  ;;  %v806_v5 = vsel %vm774_vm8, %v736_v60, %v790_v0 }
 0x145   : > { %v1347_v6 = vpop.f32.mrf.mxu0  ;;  %1503 = vmatprep.mubr.f32.mxu1 %v806_v5 }
 0x146   : > { %v647_v7 = vadd.f32 %v1346_v3, %v2047_v51  ;;  %v791_v8 = vmul.f32 0.01, %v739_v4  ;;  %vm775_vm9 = vcmp.ge.f32.partialorder %v739_v4, 0.0 }
 0x147   : > { %v1348_v9 = vpop.f32.mrf.mxu0 }
 0x148   : > { %v744_v11 = vadd.f32 %v1453_v38, %v647_v7  ;;  %v1349_v12 = vadd.f32 %v1348_v9, %v1347_v6  ;;  %v807_v13 = vsel %vm775_vm9, %v739_v4, %v791_v8  ;;  %v2082_v4 = vld [vmem:[%s2187_s4] ss:$0 sm:$0xff] }
 0x149   : > { %v1350_v14 = vpop.f32.mrf.mxu0  ;;  %1504 = vmatmul.mubr.f32.gmra.mxu1 %v807_v13 }
 0x14a   : > { %v650_v15 = vadd.f32 %v1349_v12, %v2047_v51  ;;  %vm776_vm10 = vcmp.ge.f32.partialorder %v744_v11, 0.0  ;;  %v792_v16 = vmul.f32 0.01, %v744_v11 }
 0x14b   : > { %v1351_v17 = vpop.f32.mrf.mxu0 }
 0x14c   : > { %v747_v19 = vadd.f32 %v1454_v55, %v650_v15  ;;  %v1352_v20 = vadd.f32 %v1351_v17, %v1350_v14  ;;  %v808_v21 = vsel %vm776_vm10, %v744_v11, %v792_v16 }
 0x14d   : > { %v1353_v22 = vpop.f32.mrf.mxu0  ;;  %1506 = vmatprep.mubr.f32.mxu1 %v808_v21 }
 0x14e   : > { %v655_v23 = vadd.f32 %v1352_v20, %v2047_v51  ;;  %vm777_vm11 = vcmp.ge.f32.partialorder %v747_v19, 0.0  ;;  %v793_v24 = vmul.f32 0.01, %v747_v19 }
 0x14f   : > { %v1354_v25 = vpop.f32.mrf.mxu0 }
 0x150   : > { %v752_v27 = vadd.f32 %v751_v18, %v655_v23  ;;  %v1355_v28 = vadd.f32 %v1354_v25, %v1353_v22  ;;  %v809_v29 = vsel %vm777_vm11, %v747_v19, %v793_v24 }
 0x151   : > { %v1356_v30 = vpop.f32.mrf.mxu0  ;;  %1507 = vmatmul.mubr.f32.gmra.mxu1 %v809_v29 }
 0x152   : > { %v794_v31 = vmul.f32 0.01, %v752_v27  ;;  %v658_v32 = vadd.f32 %v1355_v28, %v2047_v51  ;;  %vm778_vm12 = vcmp.ge.f32.partialorder %v752_v27, 0.0 }
 0x153   : > { %v1357_v34 = vpop.f32.mrf.mxu0 }
 0x154   : > { %v755_v35 = vadd.f32 %v754_v33, %v658_v32  ;;  %v1358_v36 = vadd.f32 %v1357_v34, %v1356_v30  ;;  %v810_v37 = vsel %vm778_vm12, %v752_v27, %v794_v31 }
 0x155   : > { %v1359_v38 = vpop.f32.mrf.mxu0  ;;  %1509 = vmatprep.mubr.f32.mxu1 %v810_v37 }
 0x156   : > { %v795_v39 = vmul.f32 0.01, %v755_v35  ;;  %v663_v40 = vadd.f32 %v1358_v36, %v2047_v51  ;;  %vm779_vm13 = vcmp.ge.f32.partialorder %v755_v35, 0.0 }
 0x157   : > { %v1360_v41 = vpop.f32.mrf.mxu0 }
 0x158   : > { %v760_v42 = vadd.f32 %v1457_v10, %v663_v40  ;;  %v1361_v43 = vadd.f32 %v1360_v41, %v1359_v38  ;;  %v811_v44 = vsel %vm779_vm13, %v755_v35, %v795_v39 }
 0x159   : > { %1510 = vmatmul.mubr.f32.gmra.mxu1 %v811_v44 }
 0x15a   : > { %v666_v45 = vadd.f32 %v1361_v43, %v2047_v51  ;;  %vm780_vm14 = vcmp.ge.f32.partialorder %v760_v42, 0.0  ;;  %v796_v46 = vmul.f32 0.01, %v760_v42 }
 0x15c   : > { %v763_v47 = vadd.f32 %v1458_v26, %v666_v45  ;;  %v812_v48 = vsel %vm780_vm14, %v760_v42, %v796_v46 }
 0x15d   : > { %1512 = vmatprep.mubr.f32.mxu1 %v812_v48 }
 0x15e   : > { %vm781_vm15 = vcmp.ge.f32.partialorder %v763_v47, 0.0  ;;  %v797_v49 = vmul.f32 0.01, %v763_v47 }
 0x160   : > { %v813_v50 = vsel %vm781_vm15, %v763_v47, %v797_v49 }
 0x161   : > { %1513 = vmatmul.mubr.f32.gmra.mxu1 %v813_v50 }
 0x1e9   : > { %v2067_v51 = vpop.f32.mrf.mxu1 }
 0x1ea   : > { %v909_v46 = vadd.f32 %v2067_v51, %v2082_v4 }
 0x1eb   : > { %v2069_v55 = vpop.f32.mrf.mxu1 }
 0x1ec   : > { %v999_v49 = vmul.f32 0.01, %v909_v46  ;;  %v904_v50 = vadd.f32 %v2082_v4, %v2069_v55  ;;  %vm983_vm0 = vcmp.ge.f32.partialorder %v909_v46, 0.0  ;;  %v1030_v55 = vld [vmem:[%s2188_s5] sm:$0x1] }
 0x1ee   : > { %v1015_v54 = vsel %vm983_vm0, %v909_v46, %v999_v49 }
 0x1f1   : > { %v2071_v56 = vpop.f32.mrf.mxu1 }
 0x1f2   : > { %v919_v40 = vadd.f32 %v2071_v56, %v2082_v4  ;;  %v998_v56 = vmul.f32 0.01, %v904_v50 }
 0x1f3   : > { %v2073_v57 = vpop.f32.mrf.mxu1 }
 0x1f4   : > { %v1001_v43 = vmul.f32 0.01, %v919_v40  ;;  %v914_v44 = vadd.f32 %v2082_v4, %v2073_v57  ;;  %vm985_vm14 = vcmp.ge.f32.partialorder %v919_v40, 0.0  ;;  %v1037_v57 = vlaneseq }
 0x1f6   : > { %v1017_v47 = vsel %vm985_vm14, %v919_v40, %v1001_v43  ;;  %v1000_v48 = vmul.f32 0.01, %v914_v44  ;;  %vm984_vm15 = vcmp.ge.f32.partialorder %v914_v44, 0.0 }
 0x1f8   : > { %v1016_v53 = vsel %vm984_vm15, %v914_v44, %v1000_v48 }
 0x1f9   : > { %v2075_v58 = vpop.f32.mrf.mxu1 }
 0x1fa   : > { %v929_v34 = vadd.f32 %v2075_v58, %v2082_v4  ;;  %v1038_v58 = vshrl.u32 %v1037_v57, 7 }
 0x1fb   : > { %v2077_v59 = vpop.f32.mrf.mxu1 }
 0x1fc   : > { %v1003_v37 = vmul.f32 0.01, %v929_v34  ;;  %v924_v38 = vadd.f32 %v2082_v4, %v2077_v59  ;;  %vm987_vm12 = vcmp.ge.f32.partialorder %v929_v34, 0.0  ;;  %v1039_v59 = vsub.s32 0, %v1038_v58 }
 0x1fe   : > { %v1019_v41 = vsel %vm987_vm12, %v929_v34, %v1003_v37  ;;  %v1002_v42 = vmul.f32 0.01, %v924_v38  ;;  %vm986_vm13 = vcmp.ge.f32.partialorder %v924_v38, 0.0 }
 0x200   : > { %v1018_v45 = vsel %vm986_vm13, %v924_v38, %v1002_v42 }
 0x201   : > { %v1502_v60 = vpop.f32.mrf.mxu1 }
 0x202   : > { %v939_v28 = vadd.f32 %v1502_v60, %v2082_v4  ;;  %v1035_v60 = vpop.permute.xlu0 %1034 }
 0x203   : > { %v933_v61 = vpop.f32.mrf.mxu1 }
 0x204   : > { %v1005_v31 = vmul.f32 0.01, %v939_v28  ;;  %v934_v32 = vadd.f32 %v2082_v4, %v933_v61  ;;  %vm989_vm10 = vcmp.ge.f32.partialorder %v939_v28, 0.0  ;;  %v1040_v61 = vrot.slane %v1035_v60, %v1039_v59 }
 0x206   : > { %v1021_v35 = vsel %vm989_vm10, %v939_v28, %v1005_v31  ;;  %v1004_v36 = vmul.f32 0.01, %v934_v32  ;;  %vm988_vm11 = vcmp.ge.f32.partialorder %v934_v32, 0.0 }
 0x208   : > { %v1020_v39 = vsel %vm988_vm11, %v934_v32, %v1004_v36 }
 0x209   : > { %v1505_v62 = vpop.f32.mrf.mxu1 }
 0x20a   : > { %v949_v22 = vadd.f32 %v1505_v62, %v2082_v4 }
 0x20b   : > { %v943_v63 = vpop.f32.mrf.mxu1 }
 0x20c   : > { %v1007_v25 = vmul.f32 0.01, %v949_v22  ;;  %v944_v26 = vadd.f32 %v2082_v4, %v943_v63  ;;  %vm991_vm8 = vcmp.ge.f32.partialorder %v949_v22, 0.0 }
 0x20e   : > { %v1023_v29 = vsel %vm991_vm8, %v949_v22, %v1007_v25  ;;  %v1006_v30 = vmul.f32 0.01, %v944_v26  ;;  %vm990_vm9 = vcmp.ge.f32.partialorder %v944_v26, 0.0 }
 0x210   : > { %v1022_v33 = vsel %vm990_vm9, %v944_v26, %v1006_v30 }
 0x211   : > { %v1508_v0 = vpop.f32.mrf.mxu1 }
 0x212   : > { %v959_v16 = vadd.f32 %v1508_v0, %v2082_v4 }
 0x213   : > { %v953_v1 = vpop.f32.mrf.mxu1 }
 0x214   : > { %v1009_v19 = vmul.f32 0.01, %v959_v16  ;;  %v954_v20 = vadd.f32 %v2082_v4, %v953_v1  ;;  %vm993_vm6 = vcmp.ge.f32.partialorder %v959_v16, 0.0 }
 0x216   : > { %v1025_v23 = vsel %vm993_vm6, %v959_v16, %v1009_v19  ;;  %v1008_v24 = vmul.f32 0.01, %v954_v20  ;;  %vm992_vm7 = vcmp.ge.f32.partialorder %v954_v20, 0.0 }
 0x218   : > { %v1024_v27 = vsel %vm992_vm7, %v954_v20, %v1008_v24 }
 0x219   : > { %v1511_v2 = vpop.f32.mrf.mxu1 }
 0x21a   : > { %v969_v10 = vadd.f32 %v1511_v2, %v2082_v4 }
 0x21b   : > { %v963_v3 = vpop.f32.mrf.mxu1 }
 0x21c   : > { %v1011_v13 = vmul.f32 0.01, %v969_v10  ;;  %v964_v14 = vadd.f32 %v2082_v4, %v963_v3  ;;  %vm995_vm4 = vcmp.ge.f32.partialorder %v969_v10, 0.0 }
 0x21e   : > { %v1027_v17 = vsel %vm995_vm4, %v969_v10, %v1011_v13  ;;  %v1010_v18 = vmul.f32 0.01, %v964_v14  ;;  %vm994_vm5 = vcmp.ge.f32.partialorder %v964_v14, 0.0 }
 0x220   : > { %v1026_v21 = vsel %vm994_vm5, %v964_v14, %v1010_v18 }
 0x221   : > { %v1514_v5 = vpop.f32.mrf.mxu1 }
 0x222   : > { %v979_v6 = vadd.f32 %v1514_v5, %v2082_v4 }
 0x223   : > { %v973_v7 = vpop.f32.mrf.mxu1 }
 0x224   : > { %vm997_vm1 = vcmp.ge.f32.partialorder %v979_v6, 0.0  ;;  %v1013_v8 = vmul.f32 0.01, %v979_v6  ;;  %v974_v9 = vadd.f32 %v2082_v4, %v973_v7 }
 0x226   : > { %v1029_v11 = vsel %vm997_vm1, %v979_v6, %v1013_v8  ;;  %v1012_v12 = vmul.f32 0.01, %v974_v9  ;;  %vm996_vm3 = vcmp.ge.f32.partialorder %v974_v9, 0.0  ;;  %vm982_vm1 = vcmp.ge.f32.partialorder %v904_v50, 0.0 }
 0x227   : > { %1516 = vmatpush3.xpose.msk.msra.mxu0 %vm1041_vm2, %v1029_v11  ;;  %v1014_v51 = vsel %vm982_vm1, %v904_v50, %v998_v56 }
 0x228   : > { %1517 = vmatprep.subr.mxu0 %v1728_v52  ;;  %v1028_v15 = vsel %vm996_vm3, %v974_v9, %v1012_v12 }
 0x22b   : > { %1518 = vmatpush3.xpose.msk.msra.mxu0 %vm1041_vm2, %v1028_v15 }
 0x22c   : > { %1519 = vmatprep.subr.mxu0 %v1728_v52 }
 0x22f   : > { %1520 = vmatpush3.xpose.msk.msra.mxu0 %vm1041_vm2, %v1027_v17 }
 0x230   : > { %1521 = vmatprep.subr.mxu0 %v1728_v52 }
 0x233   : > { %1522 = vmatpush3.xpose.msk.msra.mxu0 %vm1041_vm2, %v1026_v21 }
 0x234   : > { %1523 = vmatprep.subr.mxu0 %v1728_v52 }
 0x237   : > { %1524 = vmatpush3.xpose.msk.msra.mxu0 %vm1041_vm2, %v1025_v23 }
 0x238   : > { %1525 = vmatprep.subr.mxu0 %v1728_v52 }
 0x23b   : > { %1526 = vmatpush3.xpose.msk.msra.mxu0 %vm1041_vm2, %v1024_v27 }
 0x23c   : > { %1527 = vmatprep.subr.mxu0 %v1728_v52 }
 0x23f   : > { %1528 = vmatpush3.xpose.msk.msra.mxu0 %vm1041_vm2, %v1023_v29 }
 0x240   : > { %1529 = vmatprep.subr.mxu0 %v1728_v52 }
 0x243   : > { %1530 = vmatpush3.xpose.msk.msra.mxu0 %vm1041_vm2, %v1022_v33 }
 0x244   : > { %1531 = vmatprep.subr.mxu0 %v1728_v52 }
 0x247   : > { %1532 = vmatpush3.xpose.msk.msra.mxu0 %vm1041_vm2, %v1021_v35 }
 0x248   : > { %1533 = vmatprep.subr.mxu0 %v1728_v52 }
 0x24b   : > { %1534 = vmatpush3.xpose.msk.msra.mxu0 %vm1041_vm2, %v1020_v39 }
 0x24c   : > { %1535 = vmatprep.subr.mxu0 %v1728_v52 }
 0x24f   : > { %1536 = vmatpush3.xpose.msk.msra.mxu0 %vm1041_vm2, %v1019_v41 }
 0x250   : > { %1537 = vmatprep.subr.mxu0 %v1728_v52 }
 0x253   : > { %1538 = vmatpush3.xpose.msk.msra.mxu0 %vm1041_vm2, %v1018_v45 }
 0x254   : > { %1539 = vmatprep.subr.mxu0 %v1728_v52 }
 0x257   : > { %1540 = vmatpush3.xpose.msk.msra.mxu0 %vm1041_vm2, %v1017_v47 }
 0x258   : > { %1541 = vmatprep.subr.mxu0 %v1728_v52 }
 0x25b   : > { %1542 = vmatpush3.xpose.msk.msra.mxu0 %vm1041_vm2, %v1016_v53 }
 0x25c   : > { %1543 = vmatprep.subr.mxu0 %v1728_v52 }
 0x25f   : > { %1544 = vmatpush3.xpose.msk.msra.mxu0 %vm1041_vm2, %v1015_v54 }
 0x260   : > { %1545 = vmatprep.subr.mxu0 %v1728_v52 }
 0x263   : > { %1546 = vmatpush3.xpose.msk.msra.mxu0 %vm1041_vm2, %v1014_v51 }
 0x266   : > { %1548 = vmatmul.mubr.msk.f32.vlgmr.msra.gmra.mxu0 %vm1041_vm2, %v1030_v55 }
 0x326   : > { %v1159_v62 = vpop.f32.mrf.mxu0 }
 0x327   : > { %v1160_v63 = vadd.f32 %v1159_v62, %v1040_v61 }
 0x328   : > { %v1549_v52 = vpop.f32.mrf.mxu0 }
 0x329   : > { %v1163_v0 = vmul.f32 1.442695, %v1160_v63 }
 0x32b   : > { %1629 = vpow2.f32 %v1163_v0 }
 0x338   : > { %v1630_v1 = vpop.eup %1629 }
 0x339   : > { %1165 = vst [vmem:[%s298_s22] sm:$0x1] %v1630_v1 }
 0x33a   : > { %1672 = shalt.err (!%p1669_p10)
}
 0x33b   : > { %s1673_s24 = scalar_lea.hbm %s2146_s10, 16  ;;  %s1677_s18 = scalar_lea.hbm %s2190_s7, 32 }
 0x33c   : > { %p1674_p0 = scmp.ne.s32.totalorder %s2146_s10, %s1673_s24  ;;  %p1678_p1 = scmp.lt.s32.totalorder %s2146_s10, %s2190_s7 }
 0x33d   : > { %p1679_p3 = scmp.lt.s32.totalorder %s1677_s18, %s1673_s24 }
 0x33e   : > { %p1675_p2 = pnand %p1674_p0, %p2198_p12 }
 0x33f   : > { %p1680_p6 = por %p1679_p3, %p1678_p1 }
 0x340   : > { %p1676_p9 = pneg %p1675_p2 }
 0x342   : > { %p1681_p11 = pnand %p1680_p6, %p1676_p9 }
 0x344   : > { %1684 = shalt.err (!%p1681_p11)
}
 0x345   : > { %1555 = dma.vmem_to_hbm [thread:$0]  (%p2198_p12), %s1180_s12, 16, %s2146_s10, %s1167_s16  }
 0x346 PF: > { %s1191_s22 = sand.u32 1, %s1711_s26   ;;  %p2199_p13 = scmp.ne.s32.totalorder %s2195_s14, 0 }
 0x347   : > { %p2200_p4 = scmp.ge.s32.totalorder %s1723_s29, 2  ;;  %s1192_s25 = scalar_lea.sflag [#allocation5], %s1191_s22 }
 0x349   : > { %p1562_p5 = pnand %p2200_p4, %p2199_p13 }
 0x34b   : > { %p1563_p7 = pneg %p1562_p5 }
 0x34d   : > { %1706 = dma.done.wait (%p1563_p7), %s1192_s25, 16  }
 0x34e   : > { %1708 = vsyncadd (%p1563_p7), %s1192_s25, 4294967280  ;;  %p22_p8 = scmp.ge.s32.totalorder %s1800_s8, 4   ;;  %s2201_s26 = smov %s1715_s27 }
 0x34f   : > { %s2202_s27 = smov %s1719_s28  ;;  %s2203_s28 = smov %s1812_s11 }
 0x350   : > { %s2204_s29 = smov %s1800_s8  ;;  %24 = sbr.rel (!%p22_p8) target bundleno = 8 (0x8), region = 93 }
 0x355   :  { %1196 = vsyncpa [#allocation4], 1 }
 0x356   :  { %1198 = vsyncpa [#allocation4 + $0x1], 1 }
 0x357   :  { %1199 = vsyncpa [#allocation5], 1 }
 0x358   :  { %1201 = vsyncpa [#allocation5 + $0x1], 1 }

</bundles_post_ra>
